<compile_context>
chip_gen: v7x
topology: tpu7x:2x2x1
jax: 0.10.0
libtpu: 0.0.40
codegen_flags: <defaults>
</compile_context>

<pallas_src>
import functools

import jax
import jax.numpy as jnp
from jax.experimental import pallas as pl
from jax.experimental.pallas import tpu as pltpu


def _round_up(x: int, m: int) -> int:
    return (x + m - 1) // m * m


def _pad2(a, rows: int, cols: int):
    return jnp.pad(a, ((0, rows - a.shape[0]), (0, cols - a.shape[1])))


# ----------------------------------------------------------------------------
# Kernel body: one batch tile, all three layers fused, weights resident.
# ----------------------------------------------------------------------------
def actor_kernel(s_ref, w1_ref, b1_ref, w2_ref, b2_ref, w3_ref, b3_ref, out_ref):
    x = s_ref[...]                                                      # (TB, S) bf16
    # Layer 1: MXU matmul with f32 accumulation, bf16 bias-add + ReLU.
    h1 = jnp.dot(x, w1_ref[...], preferred_element_type=jnp.float32)
    h1 = jnp.maximum(h1.astype(jnp.bfloat16) + b1_ref[...], 0)         # bf16 VPU
    # Layer 2.
    h2 = jnp.dot(h1, w2_ref[...], preferred_element_type=jnp.float32)
    h2 = jnp.maximum(h2.astype(jnp.bfloat16) + b2_ref[...], 0)         # bf16 VPU
    # Output layer: keep bias-add + tanh in f32 (EUP) for output precision.
    a = jnp.dot(h2, w3_ref[...], preferred_element_type=jnp.float32)
    out_ref[...] = jnp.tanh(a + b3_ref[...])                           # f32 out


# ----------------------------------------------------------------------------
# One-time parameter preparation: pad to 128-lane multiples, cast matmul
# operands (weights) + hidden biases to bf16, final bias stays f32.
# Call once at init / after each optimizer step, NOT per forward.
# ----------------------------------------------------------------------------
def prepare_params(w1, b1, w2, b2, w3, b3):
    s_pad = _round_up(w1.shape[0], 128)
    f1_pad = _round_up(w1.shape[1], 128)
    f2_pad = _round_up(w2.shape[1], 128)
    a_pad = _round_up(w3.shape[1], 128)
    return (
        _pad2(w1, s_pad, f1_pad).astype(jnp.bfloat16),
        _pad2(b1, 1, f1_pad).astype(jnp.bfloat16),
        _pad2(w2, f1_pad, f2_pad).astype(jnp.bfloat16),
        _pad2(b2, 1, f2_pad).astype(jnp.bfloat16),
        _pad2(w3, f2_pad, a_pad).astype(jnp.bfloat16),
        _pad2(b3, 1, a_pad).astype(jnp.float32),
    )


# ----------------------------------------------------------------------------
# Per-call forward: pad+cast state (one fused op), pallas_call, slice output.
# ----------------------------------------------------------------------------
@functools.partial(jax.jit, static_argnames=("action_dim",))
def actor_forward(state, w1p, b1p, w2p, b2p, w3p, b3p, *, action_dim):
    batch, state_dim = state.shape
    s_pad, f1_pad = w1p.shape
    f2_pad = w2p.shape[1]
    a_pad = w3p.shape[1]

    # Batch-tile selection (static under jit):
    #   small batches -> single step (rounded to sublane multiple 8)
    #   batch >= 256  -> keep >= 2 grid steps so v7x megacore has work
    #   batch >= 1024 -> 512-wide tiles for HBM-roofline efficiency (v5e/v6e)
    if batch < 256:
        tb = _round_up(batch, 8)
    elif batch < 512:
        tb = 128
    elif batch < 1024:
        tb = 256
    else:
        tb = 512
    b_pad = _round_up(batch, tb)
    grid = (b_pad // tb,)

    # The only per-call tensor: cast + pad fuse into a single XLA op under jit.
    state_p = jnp.pad(
        state.astype(jnp.bfloat16),
        ((0, b_pad - batch), (0, s_pad - state_dim)),
    )

    cost = pl.CostEstimate(
        flops=2 * b_pad * (s_pad * f1_pad + f1_pad * f2_pad + f2_pad * a_pad),
        transcendentals=b_pad * a_pad,  # tanh
        bytes_accessed=(
            state_p.size * 2                                   # bf16 state read
            + b_pad * a_pad * 4                                # f32 output write
            + (w1p.size + w2p.size + w3p.size) * 2             # bf16 weights (read once)
            + (b1p.size + b2p.size) * 2 + b3p.size * 4         # biases
        ),
    )

    out_p = pl.pallas_call(
        actor_kernel,
        out_shape=jax.ShapeDtypeStruct((b_pad, a_pad), jnp.float32),
        grid=grid,
        in_specs=[
            pl.BlockSpec((tb, s_pad), lambda i: (i, 0)),       # state: tiled over batch
            pl.BlockSpec((s_pad, f1_pad), lambda i: (0, 0)),   # W1: VMEM-resident
            pl.BlockSpec((1, f1_pad), lambda i: (0, 0)),       # b1: resident
            pl.BlockSpec((f1_pad, f2_pad), lambda i: (0, 0)),  # W2: resident
            pl.BlockSpec((1, f2_pad), lambda i: (0, 0)),       # b2: resident
            pl.BlockSpec((f2_pad, a_pad), lambda i: (0, 0)),   # W3: resident
            pl.BlockSpec((1, a_pad), lambda i: (0, 0)),        # b3: resident
        ],
        out_specs=pl.BlockSpec((tb, a_pad), lambda i: (i, 0)),
        compiler_params=pltpu.CompilerParams(
            dimension_semantics=("parallel",),  # megacore-shard batch tiles on v7x
        ),
        cost_estimate=cost,
    )(state_p, w1p, b1p, w2p, b2p, w3p, b3p)

    # Slice off batch/feature padding (exact: padded rows/cols discarded).
    return out_p[:batch, :action_dim]


# ----------------------------------------------------------------------------
# Test / demo helpers
# ----------------------------------------------------------------------------
def init_params(key, state_dim, action_dim, fc1_dim, fc2_dim):
    """Deterministic synthetic init (uniform, fan_in-scaled like torch default)."""
    ks = jax.random.split(key, 6)

    def lin(kw, kb, fan_in, fan_out):
        bound = 1.0 / jnp.sqrt(jnp.float32(fan_in))
        w = jax.random.uniform(kw, (fan_in, fan_out), jnp.float32, -bound, bound)
        b = jax.random.uniform(kb, (1, fan_out), jnp.float32, -bound, bound)
        return w, b

    w1, b1 = lin(ks[0], ks[1], state_dim, fc1_dim)
    w2, b2 = lin(ks[2], ks[3], fc1_dim, fc2_dim)
    w3, b3 = lin(ks[4], ks[5], fc2_dim, action_dim)
    return w1, b1, w2, b2, w3, b3


def _reference(state, w1, b1, w2, b2, w3, b3):
    h1 = jnp.maximum(state @ w1 + b1, 0.0)
    h2 = jnp.maximum(h1 @ w2 + b2, 0.0)
    return jnp.tanh(h2 @ w3 + b3)


if __name__ == "__main__":
    # Small shapes consistent with the module's forward.
    batch, state_dim, action_dim, fc1_dim, fc2_dim = 2, 16, 4, 32, 32

    key = jax.random.PRNGKey(0)
    k_state, k_params, k_state2, k_state3 = jax.random.split(key, 4)

    state = jax.random.normal(k_state, (batch, state_dim), jnp.float32)
    w1, b1, w2, b2, w3, b3 = init_params(k_params, state_dim, action_dim, fc1_dim, fc2_dim)

    # Pad/cast parameters ONCE (as after an optimizer update), reuse every call.
    params = prepare_params(w1, b1, w2, b2, w3, b3)

    out = actor_forward(state, *params, action_dim=action_dim)
    out = jax.block_until_ready(out)

    ref = _reference(state, w1, b1, w2, b2, w3, b3)
    assert out.shape == (batch, action_dim)
    # bf16 matmul operands / hidden activations with f32 accumulation:
    # loose-ish tolerance vs the f32 reference.
    assert jnp.allclose(out, ref, atol=2e-2, rtol=2e-2), (out, ref)

    # Second check: a batch that exercises batch padding (single grid step).
    batch2 = 20
    state2 = jax.random.normal(k_state2, (batch2, state_dim), jnp.float32)
    out2 = jax.block_until_ready(actor_forward(state2, *params, action_dim=action_dim))
    ref2 = _reference(state2, w1, b1, w2, b2, w3, b3)
    assert out2.shape == (batch2, action_dim)
    assert jnp.allclose(out2, ref2, atol=2e-2, rtol=2e-2), (out2, ref2)

    # Third check: a batch that exercises the multi-step grid / pipelined path
    # (batch >= 256 -> tb = 128, grid > 1, "parallel" batch axis).
    batch3 = 260
    state3 = jax.random.normal(k_state3, (batch3, state_dim), jnp.float32)
    out3 = jax.block_until_ready(actor_forward(state3, *params, action_dim=action_dim))
    ref3 = _reference(state3, w1, b1, w2, b2, w3, b3)
    assert out3.shape == (batch3, action_dim)
    assert jnp.allclose(out3, ref3, atol=2e-2, rtol=2e-2), (out3, ref3)

    print("KERNEL_OK")
</pallas_src>

<mosaic_0001>
module attributes {stable_mosaic.version = 11 : i64} {
  func.func @actor_kernel(%arg0: i32, %arg1: memref<8x128xbf16, #tpu.memory_space<vmem>>, %arg2: memref<128x128xbf16, #tpu.memory_space<vmem>>, %arg3: memref<1x128xbf16, #tpu.memory_space<vmem>>, %arg4: memref<128x128xbf16, #tpu.memory_space<vmem>>, %arg5: memref<1x128xbf16, #tpu.memory_space<vmem>>, %arg6: memref<128x128xbf16, #tpu.memory_space<vmem>>, %arg7: memref<1x128xf32, #tpu.memory_space<vmem>>, %arg8: memref<8x128xf32, #tpu.memory_space<vmem>>) attributes {dimension_semantics = [#tpu.dimension_semantics<parallel>], iteration_bounds = array<i64: 1>, scalar_prefetch = 0 : i64, scratch_operands = 0 : i64, tpu.core_type = #tpu.core_type<tc>, window_params = [{transform_indices = @transform_0, window_bounds = array<i64: 8, 128>}, {pipeline_mode = #tpu.pipeline_mode<synchronous>, transform_indices = @transform_1, window_bounds = array<i64: 128, 128>}, {pipeline_mode = #tpu.pipeline_mode<synchronous>, transform_indices = @transform_2, window_bounds = array<i64: 1, 128>}, {pipeline_mode = #tpu.pipeline_mode<synchronous>, transform_indices = @transform_3, window_bounds = array<i64: 128, 128>}, {pipeline_mode = #tpu.pipeline_mode<synchronous>, transform_indices = @transform_4, window_bounds = array<i64: 1, 128>}, {pipeline_mode = #tpu.pipeline_mode<synchronous>, transform_indices = @transform_5, window_bounds = array<i64: 128, 128>}, {pipeline_mode = #tpu.pipeline_mode<synchronous>, transform_indices = @transform_6, window_bounds = array<i64: 1, 128>}, {transform_indices = @transform_7, window_bounds = array<i64: 8, 128>}]} {
    %c0 = arith.constant 0 : index
    %c0_0 = arith.constant 0 : index
    %0 = vector.load %arg1[%c0, %c0_0] : memref<8x128xbf16, #tpu.memory_space<vmem>>, vector<8x128xbf16>
    %c0_1 = arith.constant 0 : index
    %c0_2 = arith.constant 0 : index
    %1 = vector.load %arg2[%c0_1, %c0_2] : memref<128x128xbf16, #tpu.memory_space<vmem>>, vector<128x128xbf16>
    %cst = arith.constant dense<0.000000e+00> : vector<8x128xf32>
    %2 = tpu.matmul %0, %1, %cst {dimension_numbers = #tpu.dot_dimension_numbers<[1], [0], [0], [1], [0, 0, 1, 1], [], []>} : vector<8x128xbf16>, vector<128x128xbf16>, vector<8x128xf32> -> vector<8x128xf32>
    %3 = arith.truncf %2 : vector<8x128xf32> to vector<8x128xbf16>
    %c0_3 = arith.constant 0 : index
    %c0_4 = arith.constant 0 : index
    %4 = vector.load %arg3[%c0_3, %c0_4] : memref<1x128xbf16, #tpu.memory_space<vmem>>, vector<1x128xbf16>
    %5 = vector.broadcast %4 : vector<1x128xbf16> to vector<8x128xbf16>
    %6 = arith.addf %3, %5 : vector<8x128xbf16>
    %cst_5 = arith.constant 0.000000e+00 : bf16
    %7 = vector.broadcast %cst_5 : bf16 to vector<8x128xbf16>
    %8 = arith.maximumf %6, %7 : vector<8x128xbf16>
    %c0_6 = arith.constant 0 : index
    %c0_7 = arith.constant 0 : index
    %9 = vector.load %arg4[%c0_6, %c0_7] : memref<128x128xbf16, #tpu.memory_space<vmem>>, vector<128x128xbf16>
    %cst_8 = arith.constant dense<0.000000e+00> : vector<8x128xf32>
    %10 = tpu.matmul %8, %9, %cst_8 {dimension_numbers = #tpu.dot_dimension_numbers<[1], [0], [0], [1], [0, 0, 1, 1], [], []>} : vector<8x128xbf16>, vector<128x128xbf16>, vector<8x128xf32> -> vector<8x128xf32>
    %11 = arith.truncf %10 : vector<8x128xf32> to vector<8x128xbf16>
    %c0_9 = arith.constant 0 : index
    %c0_10 = arith.constant 0 : index
    %12 = vector.load %arg5[%c0_9, %c0_10] : memref<1x128xbf16, #tpu.memory_space<vmem>>, vector<1x128xbf16>
    %13 = vector.broadcast %12 : vector<1x128xbf16> to vector<8x128xbf16>
    %14 = arith.addf %11, %13 : vector<8x128xbf16>
    %cst_11 = arith.constant 0.000000e+00 : bf16
    %15 = vector.broadcast %cst_11 : bf16 to vector<8x128xbf16>
    %16 = arith.maximumf %14, %15 : vector<8x128xbf16>
    %c0_12 = arith.constant 0 : index
    %c0_13 = arith.constant 0 : index
    %17 = vector.load %arg6[%c0_12, %c0_13] : memref<128x128xbf16, #tpu.memory_space<vmem>>, vector<128x128xbf16>
    %cst_14 = arith.constant dense<0.000000e+00> : vector<8x128xf32>
    %18 = tpu.matmul %16, %17, %cst_14 {dimension_numbers = #tpu.dot_dimension_numbers<[1], [0], [0], [1], [0, 0, 1, 1], [], []>} : vector<8x128xbf16>, vector<128x128xbf16>, vector<8x128xf32> -> vector<8x128xf32>
    %c0_15 = arith.constant 0 : index
    %c0_16 = arith.constant 0 : index
    %19 = vector.load %arg7[%c0_15, %c0_16] : memref<1x128xf32, #tpu.memory_space<vmem>>, vector<1x128xf32>
    %20 = vector.broadcast %19 : vector<1x128xf32> to vector<8x128xf32>
    %21 = arith.addf %18, %20 : vector<8x128xf32>
    %22 = math.tanh %21 : vector<8x128xf32>
    %c0_17 = arith.constant 0 : index
    %c0_18 = arith.constant 0 : index
    %23 = vector.load %arg8[%c0_17, %c0_18] : memref<8x128xf32, #tpu.memory_space<vmem>>, vector<8x128xf32>
    tpu.vector_store %arg8[%c0_17, %c0_18], %22 {strides = array<i32>} : memref<8x128xf32, #tpu.memory_space<vmem>>, vector<8x128xf32>,
    return
  }
  func.func @transform_0(%arg0: i32) -> (i32, i32) {
    %c0_i32 = arith.constant 0 : i32
    %c0_i32_0 = arith.constant 0 : i32
    return %arg0, %c0_i32 : i32, i32
  }
  func.func @transform_1(%arg0: i32) -> (i32, i32) {
    %c0_i32 = arith.constant 0 : i32
    %c0_i32_0 = arith.constant 0 : i32
    %c0_i32_1 = arith.constant 0 : i32
    return %c0_i32, %c0_i32_0 : i32, i32
  }
  func.func @transform_2(%arg0: i32) -> (i32, i32) {
    %c0_i32 = arith.constant 0 : i32
    %c0_i32_0 = arith.constant 0 : i32
    %c0_i32_1 = arith.constant 0 : i32
    return %c0_i32, %c0_i32_0 : i32, i32
  }
  func.func @transform_3(%arg0: i32) -> (i32, i32) {
    %c0_i32 = arith.constant 0 : i32
    %c0_i32_0 = arith.constant 0 : i32
    %c0_i32_1 = arith.constant 0 : i32
    return %c0_i32, %c0_i32_0 : i32, i32
  }
  func.func @transform_4(%arg0: i32) -> (i32, i32) {
    %c0_i32 = arith.constant 0 : i32
    %c0_i32_0 = arith.constant 0 : i32
    %c0_i32_1 = arith.constant 0 : i32
    return %c0_i32, %c0_i32_0 : i32, i32
  }
  func.func @transform_5(%arg0: i32) -> (i32, i32) {
    %c0_i32 = arith.constant 0 : i32
    %c0_i32_0 = arith.constant 0 : i32
    %c0_i32_1 = arith.constant 0 : i32
    return %c0_i32, %c0_i32_0 : i32, i32
  }
  func.func @transform_6(%arg0: i32) -> (i32, i32) {
    %c0_i32 = arith.constant 0 : i32
    %c0_i32_0 = arith.constant 0 : i32
    %c0_i32_1 = arith.constant 0 : i32
    return %c0_i32, %c0_i32_0 : i32, i32
  }
  func.func @transform_7(%arg0: i32) -> (i32, i32) {
    %c0_i32 = arith.constant 0 : i32
    %c0_i32_0 = arith.constant 0 : i32
    return %arg0, %c0_i32 : i32, i32
  }
}

</mosaic_0001>

<bundles_post_ra>
// kernel: actor_forward.1
= control target key start
LH: loop header
LB: loop body
LE: loop exit
PB: predicated region body
PF: predicated region fallthrough
CT: control target
= control target key end

     0   :  { %12 = vsyncpa [#allocation3], 0  ;;  %s779_s0 = inlined_call_operand.vmem [shape: bf16[8,128], index: 0, kind: input, shape index: {}]   ;;  %s780_s1 = inlined_call_operand.hbm [shape: bf16[128,128], index: 1, kind: input, shape index: {}]   ;;  %s781_s2 = inlined_call_operand.vmem [shape: bf16[1,128], index: 2, kind: input, shape index: {}]   ;;  %s782_s3 = inlined_call_operand.hbm [shape: bf16[128,128], index: 3, kind: input, shape index: {}]   ;;  %s783_s4 = inlined_call_operand.vmem [shape: bf16[1,128], index: 4, kind: input, shape index: {}]   ;;  %s784_s5 = inlined_call_operand.hbm [shape: bf16[128,128], index: 5, kind: input, shape index: {}]   ;;  %s785_s6 = inlined_call_operand.vmem [shape: f32[1,128], index: 6, kind: input, shape index: {}]   ;;  %s786_s7 = inlined_call_operand.vmem [shape: f32[8,128], index: 7, kind: output, shape index: {}]  }
   0x1   :  { %13 = vsyncpa [#allocation5], 0  ;;  %s634_s24 = smov [#allocation4]   ;;  %s635_s26 = smov [#allocation2]  }
   0x2   :  { %s35_s25 = sshll.u32 %s634_s24, 4  ;;  %s21_s27 = sshll.u32 %s635_s26, 4  ;;  %s36_s25 = int_to_ptr.vmem [resolvable:$true] %s35_s25  ;;  %s682_s27 = int_to_ptr.vmem [resolvable:$true] %s21_s27 }
   0x3   :  { %s564_s30 = scalar_lea.hbm %s782_s3, 1024 }
   0x4   :  { %p565_p0 = scmp.ne.s32.totalorder %s782_s3, %s564_s30  ;;  %p568_p1 = scmp.lt.u32.totalorder %s564_s30, %s782_s3 }
   0x6   :  { %p570_p2 = pnand %p568_p1, %p565_p0 }
   0x8   :  { %573 = shalt.err (!%p570_p2)
}
   0x9   :  { %s574_s12 = scalar_lea.vmem %s36_s25, 1024  ;;  %p579_p4 = scmp.lt.s32.totalorder %s36_s25, %s36_s25 }
   0xa   :  { %p575_p3 = scmp.ne.s32.totalorder %s36_s25, %s574_s12  ;;  %p580_p5 = scmp.lt.s32.totalorder %s574_s12, %s574_s12 }
   0xc   :  { %p581_p6 = por %p580_p5, %p579_p4 }
   0xe   :  { %p582_p7 = pnand %p581_p6, %p575_p3 }
  0x10   :  { %585 = shalt.err (!%p582_p7)
}
  0x11   :  { %s636_s13 = smov 64   ;;  %s637_s14 = smov 4  }
  0x12   :  { %41 = dma.hbm_to_vmem [thread:$0]  %s782_s3, 1024, %s36_s25, [#allocation5], %s636_s13, %s636_s13, %s637_s14  }
  0x13   :  { %s586_s19 = scalar_lea.hbm %s780_s1, 1024 }
  0x14   :  { %p587_p8 = scmp.ne.s32.totalorder %s780_s1, %s586_s19  ;;  %p590_p9 = scmp.lt.u32.totalorder %s586_s19, %s780_s1 }
  0x16   :  { %p592_p10 = pnand %p590_p9, %p587_p8 }
  0x18   :  { %595 = shalt.err (!%p592_p10)
}
  0x19   :  { %s596_s24 = scalar_lea.vmem %s682_s27, 1024  ;;  %p601_p12 = scmp.lt.s32.totalorder %s682_s27, %s682_s27 }
  0x1a   :  { %p597_p11 = scmp.ne.s32.totalorder %s682_s27, %s596_s24  ;;  %p602_p13 = scmp.lt.s32.totalorder %s596_s24, %s596_s24 }
  0x1c   :  { %p603_p0 = por %p602_p13, %p601_p12 }
  0x1e   :  { %p604_p1 = pnand %p603_p0, %p597_p11 }
  0x20   :  { %607 = shalt.err (!%p604_p1)
}
  0x21   :  { %27 = dma.hbm_to_vmem [thread:$0]  %s780_s1, 1024, %s682_s27, [#allocation3], %s636_s13, %s636_s13, %s637_s14  }
  0x22   :  { %s638_s26 = smov [#allocation6]   ;;  %s608_s8 = scalar_lea.hbm %s784_s5, 1024 }
  0x23   :  { %s49_s28 = sshll.u32 %s638_s26, 4  ;;  %p609_p2 = scmp.ne.s32.totalorder %s784_s5, %s608_s8  ;;  %s50_s28 = int_to_ptr.vmem [resolvable:$true] %s49_s28 }
  0x24   :  { %p612_p3 = scmp.lt.u32.totalorder %s608_s8, %s784_s5 }
  0x26   :  { %p614_p4 = pnand %p612_p3, %p609_p2 }
  0x28   :  { %617 = shalt.err (!%p614_p4)
}
  0x29   :  { %s618_s15 = scalar_lea.vmem %s50_s28, 1024  ;;  %p623_p6 = scmp.lt.s32.totalorder %s50_s28, %s50_s28 }
  0x2a   :  { %p619_p5 = scmp.ne.s32.totalorder %s50_s28, %s618_s15  ;;  %p624_p7 = scmp.lt.s32.totalorder %s618_s15, %s618_s15 }
  0x2c   :  { %p625_p8 = por %p624_p7, %p623_p6 }
  0x2e   :  { %p626_p9 = pnand %p625_p8, %p619_p5 }
  0x30   :  { %629 = shalt.err (!%p626_p9)
}
  0x31   :  { %55 = dma.hbm_to_vmem [thread:$0]  %s784_s5, 1024, %s50_s28, [#allocation5], %s636_s13, %s636_s13, %s637_s14  }
  0x32   :  { %630 = dma.done.wait [#allocation3], 1024  }
  0x33   :  { %631 = vsyncadd [#allocation3], 4294966272 }
  0x34   :  { %632 = dma.done.wait [#allocation5], 2048  }
  0x35   :  { %633 = vsyncadd [#allocation5], 4294965248  ;;  %v639_v0 = vmov 0.0   ;;  %vm640_vm0 = vmmov 0   ;;  %v538_v1 = vld [vmem:[#allocation2] sm:$0xff]   ;;  %v539_v2 = vld [vmem:[#allocation2 + $0x8] sm:$0xff]   ;;  %v178_v24 = vlaneseq }
  0x36   :  { %470 = vmatprep.subr.bf16.mxu0 %v639_v0  ;;  %486 = vmatprep.mubr.msk.bf16.mxu0 %vm640_vm0, %v639_v0  ;;  %v540_v3 = vld [vmem:[#allocation2 + $0x10] sm:$0xff]   ;;  %v546_v4 = vld [vmem:[#allocation4] sm:$0xff]   ;;  %v541_v5 = vld [vmem:[#allocation2 + $0x18] sm:$0xff]   ;;  %v641_v36 = vmov 0  }
  0x37   :  { %490 = vmatprep.subr.bf16.mxu1 %v639_v0  ;;  %506 = vmatprep.mubr.msk.bf16.mxu1 %vm640_vm0, %v639_v0  ;;  %v547_v6 = vld [vmem:[#allocation4 + $0x8] sm:$0xff]   ;;  %v542_v7 = vld [vmem:[#allocation2 + $0x20] sm:$0xff]   ;;  %v548_v8 = vld [vmem:[#allocation4 + $0x10] sm:$0xff]   ;;  %v179_v25 = vshrl.u32 %v178_v24, 7 }
  0x38   :  { %471 = vmatpush3.bf16.msra.mxu0 %v538_v1  ;;  %491 = vmatpush3.bf16.msra.mxu1 %v546_v4  ;;  %v543_v9 = vld [vmem:[#allocation2 + $0x28] sm:$0xff]   ;;  %v549_v10 = vld [vmem:[#allocation4 + $0x18] sm:$0xff]   ;;  %v544_v11 = vld [vmem:[#allocation2 + $0x30] sm:$0xff]  }
  0x39   :  { %472 = vmatprep.subr.bf16.mxu0 %v639_v0  ;;  %492 = vmatprep.subr.bf16.mxu1 %v639_v0  ;;  %v550_v12 = vld [vmem:[#allocation4 + $0x20] sm:$0xff]   ;;  %v545_v13 = vld [vmem:[#allocation2 + $0x38] sm:$0xff]   ;;  %v551_v14 = vld [vmem:[#allocation4 + $0x28] sm:$0xff]   ;;  %v180_v28 = vsub.s32 0, %v179_v25 }
  0x3a   :  { %v68_v15 = vld [vmem:[%s779_s0] sm:$0xf]  ;;  %v552_v16 = vld [vmem:[#allocation4 + $0x30] sm:$0xff]   ;;  %v553_v17 = vld [vmem:[#allocation4 + $0x38] sm:$0xff]  }
  0x3b   :  { %v554_v18 = vld [vmem:[#allocation6] sm:$0xff]   ;;  %v555_v19 = vld [vmem:[#allocation6 + $0x8] sm:$0xff]   ;;  %v556_v20 = vld [vmem:[#allocation6 + $0x10] sm:$0xff]  }
  0x3c   :  { %473 = vmatpush3.bf16.msra.mxu0 %v539_v2  ;;  %493 = vmatpush3.bf16.msra.mxu1 %v547_v6  ;;  %v557_v21 = vld [vmem:[#allocation6 + $0x18] sm:$0xff]   ;;  %v558_v22 = vld [vmem:[#allocation6 + $0x20] sm:$0xff]   ;;  %v559_v23 = vld [vmem:[#allocation6 + $0x28] sm:$0xff]  }
  0x3d   :  { %474 = vmatprep.subr.bf16.mxu0 %v639_v0  ;;  %494 = vmatprep.subr.bf16.mxu1 %v639_v0  ;;  %v174_v26 = vld [vmem:[%s781_s2] sm:$0x1]  ;;  %v560_v38 = vld [vmem:[#allocation6 + $0x30] sm:$0xff]   ;;  %v561_v39 = vld [vmem:[#allocation6 + $0x38] sm:$0xff]  }
  0x3e   :  { %v176_v27 = vpack.i.b16 %v174_v26, %v174_v26  ;;  %v289_v40 = vld [vmem:[%s783_s4] sm:$0x1] }
  0x3f   :  { %v291_v41 = vpack.i.b16 %v289_v40, %v289_v40  ;;  %v434_v50 = vld [vmem:[%s785_s6] ss:$0 sm:$0xff] }
  0x40   :  { %475 = vmatpush3.bf16.msra.mxu0 %v540_v3  ;;  %495 = vmatpush3.bf16.msra.mxu1 %v548_v8  ;;  %v181_v29 = vrot.slane %v176_v27, %v180_v28 }
  0x41   :  { %476 = vmatprep.subr.bf16.mxu0 %v639_v0  ;;  %496 = vmatprep.subr.bf16.mxu1 %v639_v0  ;;  %v296_v42 = vrot.slane %v291_v41, %v180_v28 }
  0x44   :  { %477 = vmatpush3.bf16.msra.mxu0 %v541_v5  ;;  %497 = vmatpush3.bf16.msra.mxu1 %v549_v10 }
  0x45   :  { %478 = vmatprep.subr.bf16.mxu0 %v639_v0  ;;  %498 = vmatprep.subr.bf16.mxu1 %v639_v0 }
  0x48   :  { %479 = vmatpush3.bf16.msra.mxu0 %v542_v7  ;;  %499 = vmatpush3.bf16.msra.mxu1 %v550_v12 }
  0x49   :  { %480 = vmatprep.subr.bf16.mxu0 %v639_v0  ;;  %500 = vmatprep.subr.bf16.mxu1 %v639_v0 }
  0x4c   :  { %481 = vmatpush3.bf16.msra.mxu0 %v543_v9  ;;  %501 = vmatpush3.bf16.msra.mxu1 %v551_v14 }
  0x4d   :  { %482 = vmatprep.subr.bf16.mxu0 %v639_v0  ;;  %502 = vmatprep.subr.bf16.mxu1 %v639_v0 }
  0x50   :  { %483 = vmatpush3.bf16.msra.mxu0 %v544_v11  ;;  %503 = vmatpush3.bf16.msra.mxu1 %v552_v16 }
  0x51   :  { %484 = vmatprep.subr.bf16.mxu0 %v639_v0  ;;  %504 = vmatprep.subr.bf16.mxu1 %v639_v0 }
  0x54   :  { %485 = vmatpush3.bf16.msra.mxu0 %v545_v13  ;;  %505 = vmatpush3.bf16.msra.mxu1 %v553_v17 }
  0x55   :  { %510 = vmatprep.subr.bf16.mxu0 %v639_v0 }
  0x57   :  { %487 = vmatmul.mubr.bf16.vlgmr.msra.gmra.mrb[0].mxu0 %v68_v15 }
  0x58   :  { %526 = vmatprep.mubr.msk.bf16.mxu0 %vm640_vm0, %v639_v0  ;;  %511 = vmatpush3.bf16.msra.mxu0 %v554_v18 }
  0x59   :  { %512 = vmatprep.subr.bf16.mxu0 %v639_v0 }
  0x5c   :  { %513 = vmatpush3.bf16.msra.mxu0 %v555_v19 }
  0x5d   :  { %514 = vmatprep.subr.bf16.mxu0 %v639_v0 }
  0x60   :  { %515 = vmatpush3.bf16.msra.mxu0 %v556_v20 }
  0x61   :  { %516 = vmatprep.subr.bf16.mxu0 %v639_v0 }
  0x64   :  { %517 = vmatpush3.bf16.msra.mxu0 %v557_v21 }
  0x65   :  { %518 = vmatprep.subr.bf16.mxu0 %v639_v0 }
  0x68   :  { %519 = vmatpush3.bf16.msra.mxu0 %v558_v22 }
  0x69   :  { %520 = vmatprep.subr.bf16.mxu0 %v639_v0 }
  0x6c   :  { %521 = vmatpush3.bf16.msra.mxu0 %v559_v23 }
  0x6d   :  { %522 = vmatprep.subr.bf16.mxu0 %v639_v0 }
  0x70   :  { %523 = vmatpush3.bf16.msra.mxu0 %v560_v38 }
  0x71   :  { %524 = vmatprep.subr.bf16.mxu0 %v639_v0 }
  0x74   :  { %525 = vmatpush3.bf16.msra.mxu0 %v561_v39 }
 0x12a   :  { %v167_v30 = vpop.f32.mrb[0].mxu0 }
 0x12b   :  { %v173_v31 = vpack.c.bf16 %v167_v30, %v167_v30  ;;  %v488_v32 = vpop.f32.mrb[1].mxu0 }
 0x12c   :  { %v170_v33 = vpop.f32.mrb[2].mxu0 }
 0x12d   :  { %v182_v34 = vadd.bf16 %v181_v29, %v173_v31  ;;  %v489_v35 = vpop.f32.mrb[3].mxu0 }
 0x12f   :  { %v183_v37 = vmax.bf16 %v641_v36, %v182_v34 }
 0x131   :  { %507 = vmatmul.mubr.bf16.vlgmr.msra.gmra.mrb[0].mxu1 %v183_v37 }
 0x204   :  { %v282_v43 = vpop.f32.mrb[0].mxu1 }
 0x205   :  { %v288_v44 = vpack.c.bf16 %v282_v43, %v282_v43  ;;  %v508_v45 = vpop.f32.mrb[1].mxu1 }
 0x206   :  { %v285_v46 = vpop.f32.mrb[2].mxu1 }
 0x207   :  { %v297_v47 = vadd.bf16 %v296_v42, %v288_v44  ;;  %v509_v48 = vpop.f32.mrb[3].mxu1 }
 0x209   :  { %v298_v49 = vmax.bf16 %v641_v36, %v297_v47 }
 0x20b   :  { %527 = vmatmul.mubr.bf16.vlgmr.msra.gmra.mrb[4].mxu0 %v298_v49 }
 0x2de   :  { %v404_v51 = vpop.f32.mrb[4].mxu0 }
 0x2df   :  { %v405_v52 = vadd.f32 %v434_v50, %v404_v51  ;;  %v528_v53 = vpop.f32.mrb[5].mxu0 }
 0x2e0   :  { %v407_v54 = vpop.f32.mrb[6].mxu0 }
 0x2e1   :  { %562 = vtanh.f32 %v405_v52  ;;  %v529_v55 = vpop.f32.mrb[7].mxu0 }
 0x2eb   :  { %v563_v56 = vpop.eup %562 }
 0x2ec   :  { %411 = vst [vmem:[%s786_s7] sm:$0xff] %v563_v56 }
 0x2ed   :  { %416 = vsyncpa [#allocation3], 1 }
 0x2ee   :  { %417 = vsyncpa [#allocation5], 1 }

</bundles_post_ra>
